<compile_context>
chip_gen: v7x
topology: tpu7x:2x2x1
jax: 0.10.0
libtpu: 0.0.40
codegen_flags: <defaults>
</compile_context>

<pallas_src>
import functools

import jax
import jax.numpy as jnp
from jax.experimental import pallas as pl
from jax.experimental.pallas import tpu as pltpu


def _bpr_loss_kernel(pos_ref, neg_ref, out_ref, acc_ref, *,
                     block_rows, lanes, n_total, needs_mask):
    i = pl.program_id(0)

    @pl.when(i == 0)
    def _init():
        acc_ref[...] = jnp.zeros_like(acc_ref)

    # loss_i = -log(sigmoid(pos - neg)) = softplus(-(pos - neg))
    # numerically stable softplus(x) = max(x, 0) + log1p(exp(-|x|))
    diff = pos_ref[...].astype(jnp.float32) - neg_ref[...].astype(jnp.float32)
    x = -diff
    per_elem = jnp.maximum(x, 0.0) + jnp.log1p(jnp.exp(-jnp.abs(x)))

    if needs_mask:
        # Mask out the zero-padded tail so it does not contribute to the sum.
        row = (jax.lax.broadcasted_iota(jnp.int32, per_elem.shape, 0)
               + i * block_rows)
        col = jax.lax.broadcasted_iota(jnp.int32, per_elem.shape, 1)
        full_rows = n_total // lanes
        rem = n_total % lanes
        valid = (row < full_rows) | ((row == full_rows) & (col < rem))
        per_elem = jnp.where(valid, per_elem, 0.0)

    # Vreg-shaped running sum: pure VALU work per tile, no per-tile XLU reduce.
    acc_ref[...] += per_elem

    @pl.when(i == pl.num_programs(0) - 1)
    def _finalize():
        # Single cross-lane/sublane reduction + single division by the TOTAL
        # element count (not the per-tile size).
        out_ref[0, 0] = jnp.sum(acc_ref[...]) / jnp.float32(n_total)


def _round_up(x: int, m: int) -> int:
    return pl.cdiv(x, m) * m


def bpr_loss(pos_scores: jax.Array, neg_scores: jax.Array,
             *, block_rows: int = 512, lanes: int = 512) -> jax.Array:
    """mean(-log(sigmoid(pos - neg))) computed by a tiled Pallas TPU kernel."""
    assert pos_scores.shape == neg_scores.shape
    n_total = pos_scores.size
    assert n_total > 0

    pos_flat = pos_scores.reshape(-1)
    neg_flat = neg_scores.reshape(-1)

    # Lane-dense 2-D layout: (rows, lanes), lanes a large multiple of 128.
    rows = pl.cdiv(n_total, lanes)
    # Block rows: multiple of 8 sublanes; shrink for tiny inputs.
    blk_rows = min(block_rows, _round_up(rows, 8))
    padded_rows = _round_up(rows, blk_rows)
    padded_n = padded_rows * lanes
    needs_mask = padded_n != n_total
    if needs_mask:
        pos_flat = jnp.pad(pos_flat, (0, padded_n - n_total))
        neg_flat = jnp.pad(neg_flat, (0, padded_n - n_total))
    pos2d = pos_flat.reshape(padded_rows, lanes)
    neg2d = neg_flat.reshape(padded_rows, lanes)

    num_blocks = padded_rows // blk_rows

    kernel = functools.partial(
        _bpr_loss_kernel,
        block_rows=blk_rows,
        lanes=lanes,
        n_total=n_total,
        needs_mask=needs_mask,
    )

    out = pl.pallas_call(
        kernel,
        out_shape=jax.ShapeDtypeStruct((1, 1), jnp.float32),
        grid=(num_blocks,),
        in_specs=[
            pl.BlockSpec((blk_rows, lanes), lambda i: (i, 0)),
            pl.BlockSpec((blk_rows, lanes), lambda i: (i, 0)),
        ],
        # Scalar result lives in SMEM, resident across the reduction grid.
        out_specs=pl.BlockSpec(memory_space=pltpu.MemorySpace.SMEM),
        scratch_shapes=[pltpu.VMEM((blk_rows, lanes), jnp.float32)],
        compiler_params=pltpu.CompilerParams(
            dimension_semantics=("arbitrary",)),
    )(pos2d, neg2d)
    return out[0, 0]


if __name__ == "__main__":
    key = jax.random.PRNGKey(0)
    loss_fn = jax.jit(bpr_loss)

    # Small example consistent with the module: 8 "queries" x 128 score pairs.
    # (Exercises the padded/masked tail path: 1024 elems -> one (8, 512) tile.)
    k_pos, k_neg = jax.random.split(key)
    batch, neg = 8, 128
    pos_scores = jax.random.normal(k_pos, (batch, neg), dtype=jnp.float32)
    neg_scores = jax.random.normal(k_neg, (batch, neg), dtype=jnp.float32)

    loss = jax.block_until_ready(loss_fn(pos_scores, neg_scores))
    ref = jnp.mean(-jax.nn.log_sigmoid(pos_scores - neg_scores))
    assert jnp.allclose(loss, ref, rtol=1e-5, atol=1e-5), (loss, ref)

    # Second check: multi-block reduction grid (3 tiles, no padding needed).
    k_pos2, k_neg2 = jax.random.split(jax.random.PRNGKey(1))
    pos2 = jax.random.normal(k_pos2, (2048, 384), dtype=jnp.float32)
    neg2 = jax.random.normal(k_neg2, (2048, 384), dtype=jnp.float32)
    loss2 = jax.block_until_ready(loss_fn(pos2, neg2))
    ref2 = jnp.mean(-jax.nn.log_sigmoid(pos2 - neg2))
    assert jnp.allclose(loss2, ref2, rtol=1e-5, atol=1e-5), (loss2, ref2)

    print("KERNEL_OK")
</pallas_src>

<mosaic_0001>
module attributes {stable_mosaic.version = 11 : i64} {
  func.func @_bpr_loss_kernel(%arg0: i32, %arg1: memref<8x512xf32, #tpu.memory_space<vmem>>, %arg2: memref<8x512xf32, #tpu.memory_space<vmem>>, %arg3: memref<1x1xf32, #tpu.memory_space<smem>>, %arg4: memref<8x512xf32, #tpu.memory_space<vmem>>) attributes {dimension_semantics = [#tpu.dimension_semantics<arbitrary>], iteration_bounds = array<i64: 1>, scalar_prefetch = 0 : i64, scratch_operands = 1 : i64, tpu.core_type = #tpu.core_type<tc>, window_params = [{transform_indices = @transform_0, window_bounds = array<i64: 8, 512>}, {transform_indices = @transform_1, window_bounds = array<i64: 8, 512>}, {transform_indices = @transform_2, window_bounds = array<i64: 1, 1>}]} {
    %c0_i32 = arith.constant 0 : i32
    %0 = arith.cmpi eq, %arg0, %c0_i32 : i32
    %1 = arith.extui %0 : i1 to i32
    %c0_i32_0 = arith.constant 0 : i32
    %2 = arith.cmpi ne, %1, %c0_i32_0 : i32
    scf.if %2 {
      %cst_15 = arith.constant 0.000000e+00 : f32
      %37 = vector.broadcast %cst_15 : f32 to vector<8x512xf32>
      %c0_16 = arith.constant 0 : index
      %c0_17 = arith.constant 0 : index
      %38 = vector.load %arg4[%c0_16, %c0_17] : memref<8x512xf32, #tpu.memory_space<vmem>>, vector<8x512xf32>
      tpu.vector_store %arg4[%c0_16, %c0_17], %37 {strides = array<i32>} : memref<8x512xf32, #tpu.memory_space<vmem>>, vector<8x512xf32>,
    } else {
    }
    %c0 = arith.constant 0 : index
    %c0_1 = arith.constant 0 : index
    %3 = vector.load %arg1[%c0, %c0_1] : memref<8x512xf32, #tpu.memory_space<vmem>>, vector<8x512xf32>
    %c0_2 = arith.constant 0 : index
    %c0_3 = arith.constant 0 : index
    %4 = vector.load %arg2[%c0_2, %c0_3] : memref<8x512xf32, #tpu.memory_space<vmem>>, vector<8x512xf32>
    %5 = arith.subf %3, %4 : vector<8x512xf32>
    %cst = arith.constant 0.000000e+00 : f32
    %6 = vector.broadcast %cst : f32 to vector<8x512xf32>
    %7 = arith.subf %6, %5 : vector<8x512xf32>
    %cst_4 = arith.constant 0.000000e+00 : f32
    %8 = vector.broadcast %cst_4 : f32 to vector<8x512xf32>
    %9 = arith.maximumf %7, %8 : vector<8x512xf32>
    %10 = math.absf %7 : vector<8x512xf32>
    %cst_5 = arith.constant 0.000000e+00 : f32
    %11 = vector.broadcast %cst_5 : f32 to vector<8x512xf32>
    %12 = arith.subf %11, %10 : vector<8x512xf32>
    %13 = math.exp %12 : vector<8x512xf32>
    %14 = math.log1p %13 : vector<8x512xf32>
    %15 = arith.addf %9, %14 : vector<8x512xf32>
    %16 = tpu.iota {dimensions = array<i32: 0>} : vector<8x512xi32>
    %c8_i32 = arith.constant 8 : i32
    %17 = arith.muli %arg0, %c8_i32 : i32
    %18 = vector.broadcast %17 : i32 to vector<8x512xi32>
    %19 = arith.addi %16, %18 : vector<8x512xi32>
    %20 = tpu.iota {dimensions = array<i32: 1>} : vector<8x512xi32>
    %c2_i32 = arith.constant 2 : i32
    %21 = vector.broadcast %c2_i32 : i32 to vector<8x512xi32>
    %22 = arith.cmpi slt, %19, %21 : vector<8x512xi32>
    %c2_i32_6 = arith.constant 2 : i32
    %23 = vector.broadcast %c2_i32_6 : i32 to vector<8x512xi32>
    %24 = arith.cmpi eq, %19, %23 : vector<8x512xi32>
    %c0_i32_7 = arith.constant 0 : i32
    %25 = vector.broadcast %c0_i32_7 : i32 to vector<8x512xi32>
    %26 = arith.cmpi slt, %20, %25 : vector<8x512xi32>
    %27 = arith.andi %24, %26 : vector<8x512xi1>
    %28 = arith.ori %22, %27 : vector<8x512xi1>
    %cst_8 = arith.constant 0.000000e+00 : f32
    %29 = vector.broadcast %cst_8 : f32 to vector<8x512xf32>
    %30 = arith.select %28, %15, %29 : vector<8x512xi1>, vector<8x512xf32>
    %c0_9 = arith.constant 0 : index
    %c0_10 = arith.constant 0 : index
    %31 = vector.load %arg4[%c0_9, %c0_10] : memref<8x512xf32, #tpu.memory_space<vmem>>, vector<8x512xf32>
    %32 = arith.addf %31, %30 : vector<8x512xf32>
    %c0_11 = arith.constant 0 : index
    %c0_12 = arith.constant 0 : index
    %33 = vector.load %arg4[%c0_11, %c0_12] : memref<8x512xf32, #tpu.memory_space<vmem>>, vector<8x512xf32>
    tpu.vector_store %arg4[%c0_11, %c0_12], %32 {strides = array<i32>} : memref<8x512xf32, #tpu.memory_space<vmem>>, vector<8x512xf32>,
    %c0_i32_13 = arith.constant 0 : i32
    %34 = arith.cmpi eq, %arg0, %c0_i32_13 : i32
    %35 = arith.extui %34 : i1 to i32
    %c0_i32_14 = arith.constant 0 : i32
    %36 = arith.cmpi ne, %35, %c0_i32_14 : i32
    scf.if %36 {
      %c0_15 = arith.constant 0 : index
      %c0_16 = arith.constant 0 : index
      %37 = vector.load %arg4[%c0_15, %c0_16] : memref<8x512xf32, #tpu.memory_space<vmem>>, vector<8x512xf32>
      %38 = vector.shape_cast %37 : vector<8x512xf32> to vector<1x8x512xf32>
      %cst_17 = arith.constant dense<0.000000e+00> : vector<1xf32>
      %39 = vector.multi_reduction <add>, %38, %cst_17 [1, 2] : vector<1x8x512xf32> to vector<1xf32>
      %40 = vector.shape_cast %39 : vector<1xf32> to vector<1x1x1xf32>
      %41 = vector.extract %40[0, 0, 0] : f32 from vector<1x1x1xf32>
      %cst_18 = arith.constant 1.024000e+03 : f32
      %42 = arith.divf %41, %cst_18 : f32
      %c0_19 = arith.constant 0 : index
      %c0_20 = arith.constant 0 : index
      %43 = memref.load %arg3[%c0_19, %c0_20] : memref<1x1xf32, #tpu.memory_space<smem>>
      memref.store %42, %arg3[%c0_19, %c0_20] : memref<1x1xf32, #tpu.memory_space<smem>>
    } else {
    }
    return
  }
  func.func @transform_0(%arg0: i32) -> (i32, i32) {
    %c0_i32 = arith.constant 0 : i32
    %c0_i32_0 = arith.constant 0 : i32
    return %arg0, %c0_i32 : i32, i32
  }
  func.func @transform_1(%arg0: i32) -> (i32, i32) {
    %c0_i32 = arith.constant 0 : i32
    %c0_i32_0 = arith.constant 0 : i32
    return %arg0, %c0_i32 : i32, i32
  }
  func.func @transform_2(%arg0: i32) -> (i32, i32) {
    %c0_i32 = arith.constant 0 : i32
    %c0_i32_0 = arith.constant 0 : i32
    %c0_i32_1 = arith.constant 0 : i32
    return %c0_i32, %c0_i32_0 : i32, i32
  }
}

</mosaic_0001>

<bundles_post_ra>
// kernel: bpr_loss.1
= control target key start
LH: loop header
LB: loop body
LE: loop exit
PB: predicated region body
PF: predicated region fallthrough
CT: control target
= control target key end

     0   :  { %s288_s0 = inlined_call_operand.vmem [shape: f32[8,512], index: 0, kind: input, shape index: {}]   ;;  %s289_s1 = inlined_call_operand.vmem [shape: f32[8,512], index: 1, kind: input, shape index: {}]   ;;  %s290_s2 = inlined_call_operand.hbm [shape: f32[1,1], index: 2, kind: output, shape index: {}]  }
   0x1   :  { %v20_v0 = vld [vmem:[%s288_s0] sm:$0xff]  ;;  %v21_v1 = vld [vmem:[%s288_s0 + $0x8] sm:$0xff]  ;;  %v22_v2 = vld [vmem:[%s288_s0 + $0x10] sm:$0xff] }
   0x2   :  { %v23_v3 = vld [vmem:[%s288_s0 + $0x18] sm:$0xff]  ;;  %v24_v4 = vld [vmem:[%s289_s1] sm:$0xff]  ;;  %v25_v5 = vld [vmem:[%s289_s1 + $0x8] sm:$0xff] }
   0x3   :  { %v26_v6 = vld [vmem:[%s289_s1 + $0x10] sm:$0xff]  ;;  %v27_v7 = vld [vmem:[%s289_s1 + $0x18] sm:$0xff]  ;;  %v28_v8 = vsub.f32 %v20_v0, %v24_v4  ;;  %v29_v9 = vsub.f32 %v21_v1, %v25_v5 }
   0x4   :  { %7 = vsyncpa [#allocation4], 0  ;;  %v30_v10 = vsub.f32 %v22_v2, %v26_v6  ;;  %v31_v11 = vsub.f32 %v23_v3, %v27_v7  ;;  %v96_v41 = vlaneseq  ;;  %s192_s27 = scalar_lea.hbm %s290_s2, 16 }
   0x5   :  { %v244_v12 = vsub.f32 0.0, %v28_v8  ;;  %v246_v13 = vsub.f32 0.0, %v29_v9  ;;  %p193_p0 = scmp.ne.s32.totalorder %s290_s2, %s192_s27  ;;  %p196_p1 = scmp.lt.u32.totalorder %s192_s27, %s290_s2 }
   0x6   :  { %v248_v14 = vsub.f32 0.0, %v30_v10  ;;  %v250_v15 = vsub.f32 0.0, %v31_v11  ;;  %v97_v49 = vshrl.u32 %v96_v41, 7 }
   0x7   :  { %v40_v16 = vand.u32 2147483647, %v244_v12  ;;  %v41_v17 = vand.u32 2147483647, %v246_v13  ;;  %v36_v51 = vmax.f32 %v244_v12, 0.0  ;;  %v37_v56 = vmax.f32 %v246_v13, 0.0  ;;  %p198_p2 = pnand %p196_p1, %p193_p0 }
   0x8   :  { %v42_v18 = vand.u32 2147483647, %v248_v14  ;;  %v43_v19 = vand.u32 2147483647, %v250_v15  ;;  %v38_v61 = vmax.f32 %v248_v14, 0.0  ;;  %vm106_vm3 = vcmp.lt.s32.totalorder %v97_v49, 2 }
   0x9   :  { %v44_v20 = vsub.f32 0.0, %v40_v16  ;;  %v45_v21 = vsub.f32 0.0, %v41_v17  ;;  %v39_v3 = vmax.f32 %v250_v15, 0.0 }
   0xa   :  { %v46_v22 = vsub.f32 0.0, %v42_v18  ;;  %v47_v23 = vsub.f32 0.0, %v43_v19 }
   0xb   :  { %v48_v24 = vmul.f32 1.442695, %v44_v20  ;;  %v50_v25 = vmul.f32 1.442695, %v45_v21 }
   0xc   :  { %v52_v26 = vmul.f32 1.442695, %v46_v22  ;;  %v54_v27 = vmul.f32 1.442695, %v47_v23 }
   0xd   :  { %176 = vpow2.f32 %v48_v24 }
   0xe   :  { %178 = vpow2.f32 %v50_v25 }
   0xf   :  { %180 = vpow2.f32 %v52_v26 }
  0x10   :  { %182 = vpow2.f32 %v54_v27 }
  0x17   :  { %v177_v28 = vpop.eup %176 }
  0x18   :  { %v179_v29 = vpop.eup %178  ;;  %v56_v30 = vadd.f32 1.0, %v177_v28  ;;  %v59_v35 = vmul.f32 -0.5, %v177_v28  ;;  %v62_v42 = vand.u32 2147483647, %v177_v28 }
  0x19   :  { %v181_v31 = vpop.eup %180  ;;  %v65_v32 = vadd.f32 1.0, %v179_v29  ;;  %v68_v36 = vmul.f32 -0.5, %v179_v29  ;;  %v71_v44 = vand.u32 2147483647, %v179_v29 }
  0x1a   :  { %v183_v33 = vpop.eup %182  ;;  %184 = vlog2.f32 %v56_v30  ;;  %v74_v34 = vadd.f32 1.0, %v181_v31  ;;  %v77_v38 = vmul.f32 -0.5, %v181_v31  ;;  %v60_v39 = vadd.f32 1.0, %v59_v35 }
  0x1b   :  { %186 = vlog2.f32 %v65_v32  ;;  %v83_v37 = vadd.f32 1.0, %v183_v33  ;;  %v86_v40 = vmul.f32 -0.5, %v183_v33  ;;  %v69_v43 = vadd.f32 1.0, %v68_v36 }
  0x1c   :  { %188 = vlog2.f32 %v74_v34  ;;  %v78_v45 = vadd.f32 1.0, %v77_v38  ;;  %v80_v46 = vand.u32 2147483647, %v181_v31  ;;  %v61_v47 = vmul.f32 %v177_v28, %v60_v39 }
  0x1d   :  { %190 = vlog2.f32 %v83_v37  ;;  %v87_v48 = vadd.f32 1.0, %v86_v40  ;;  %vm257_vm0 = vcmp.lt.f32.partialorder %v62_v42, 0.0004427343  ;;  %v70_v53 = vmul.f32 %v179_v29, %v69_v43 }
  0x1e   :  { %v89_v54 = vand.u32 2147483647, %v183_v33  ;;  %vm262_vm1 = vcmp.lt.f32.partialorder %v71_v44, 0.0004427343  ;;  %v79_v59 = vmul.f32 %v181_v31, %v78_v45  ;;  %vm81_vm2 = vcmp.lt.f32.partialorder %v80_v46, 0.0004427343 }
  0x1f   :  { %v88_v1 = vmul.f32 %v183_v33, %v87_v48 }
  0x20   :  { %vm90_vm4 = vcmp.lt.f32.partialorder %v89_v54, 0.0004427343 }
  0x24   :  { %v185_v50 = vpop.eup %184 }
  0x25   :  { %v187_v55 = vpop.eup %186  ;;  %v58_v57 = vmul.f32 0.6931472, %v185_v50 }
  0x26   :  { %v189_v60 = vpop.eup %188  ;;  %v67_v62 = vmul.f32 0.6931472, %v187_v55 }
  0x27   :  { %v64_v63 = vsel %vm257_vm0, %v61_v47, %v58_v57  ;;  %v76_v0 = vmul.f32 0.6931472, %v189_v60  ;;  %v191_v2 = vpop.eup %190 }
  0x28   :  { %v73_v4 = vsel %vm262_vm1, %v70_v53, %v67_v62  ;;  %v92_v5 = vadd.f32 %v64_v63, %v36_v51  ;;  %v85_v7 = vmul.f32 0.6931472, %v191_v2 }
  0x29   :  { %v82_v6 = vsel %vm81_vm2, %v79_v59, %v76_v0  ;;  %v93_v8 = vadd.f32 %v73_v4, %v37_v56 }
  0x2a   :  { %v94_v9 = vadd.f32 %v82_v6, %v38_v61  ;;  %v120_v10 = vsel %vm106_vm3, %v92_v5, 0.0  ;;  %v91_v11 = vsel %vm90_vm4, %v88_v1, %v85_v7 }
  0x2b   :  { %v121_v12 = vsel %vm106_vm3, %v93_v8, 0.0  ;;  %v95_v13 = vadd.f32 %v91_v11, %v39_v3 }
  0x2c   :  { %v122_v14 = vsel %vm106_vm3, %v94_v9, 0.0  ;;  %v143_v16 = vadd.f32 %v121_v12, %v120_v10 }
  0x2d   :  { %v123_v15 = vsel %vm106_vm3, %v95_v13, 0.0 }
  0x2e   :  { %v144_v17 = vadd.f32 %v143_v16, %v122_v14 }
  0x30   :  { %v145_v18 = vadd.f32 %v144_v17, %v123_v15 }
  0x32   :  { %146 = vadd.xlane.f32.xlu0 %v145_v18 }
  0xbf   :  { %v147_v19 = vpop.xlane.xlu0 %146 }
  0xc0   :  { %v148_v20 = vrot.slane %v147_v19, 4 }
  0xc2   :  { %v149_v21 = vadd.f32 %v148_v20, %v147_v19 }
  0xc4   :  { %v150_v22 = vrot.slane %v149_v21, 2 }
  0xc6   :  { %v151_v23 = vadd.f32 %v150_v22, %v149_v21 }
  0xc8   :  { %v152_v24 = vrot.slane %v151_v23, 1 }
  0xca   :  { %v153_v25 = vadd.f32 %v152_v24, %v151_v23 }
  0xcc   :  { %173 = vpush %v153_v25 }
  0xfd   :  { %s174_s0 = spop %173 }
  0xfe   :  { %s157_s1 = smul.f32 0.0009765625, %s174_s0 }
 0x100   :  { %159 = sst [smem:[#allocation3]] %s157_s1 }
 0x101   :  { %201 = shalt.err (!%p198_p2)
}
 0x102   :  { %s204_s4 = smov [#allocation3]  }
 0x103   :  { %167 = dma.smem_to_hbm %s204_s4, 16, %s290_s2, [#allocation4]  }
 0x104   :  { %202 = dma.done.wait [#allocation4], 16  }
 0x105   :  { %203 = vsyncadd [#allocation4], 4294967280 }
 0x106   :  { %171 = sfence }
 0x107   :  { %172 = vsyncpa [#allocation4], 1 }

</bundles_post_ra>
